<compile_context>
chip_gen: v7x
topology: tpu7x:2x2x1
jax: 0.10.0
libtpu: 0.0.40
codegen_flags: <defaults>
</compile_context>

<pallas_src>
import functools
import math

import jax
import jax.numpy as jnp
from jax import lax
from jax.experimental import pallas as pl
from jax.experimental.pallas import tpu as pltpu


def _qkv_proj_kernel(x_ref, wq_ref, wk_ref, wv_ref, bq_ref, bk_ref, bv_ref,
                     q_ref, k_ref, v_ref, *, compute_dtype):
    """One grid step = one (batch, row-tile): q/k/v = x @ W{q,k,v} + b."""
    x = x_ref[0].astype(compute_dtype)                      # (blk, C)
    for w_ref, b_ref, o_ref in ((wq_ref, bq_ref, q_ref),
                                (wk_ref, bk_ref, k_ref),
                                (wv_ref, bv_ref, v_ref)):
        acc = jnp.dot(x, w_ref[...],
                      preferred_element_type=jnp.float32)   # f32 accumulate
        o_ref[0] = (acc + b_ref[...]).astype(o_ref.dtype)   # lane-dense store


def _flash_attn_proj_kernel(q_ref, k_ref, v_ref, wp_ref, bp_ref, o_ref,
                            acc_sc, m_sc, l_sc, *,
                            n_head, block_q, block_kv, compute_dtype):
    """Flash attention with online softmax + fused output projection.

    grid = (B, n_q, n_kv); kv is the innermost ("arbitrary") axis.  Scratch
    (acc, m, l) carries per-head running state across kv steps.
    """
    qi = pl.program_id(1)
    kv = pl.program_id(2)
    H = n_head
    C = q_ref.shape[-1]
    D = C // H

    @pl.when(kv == 0)
    def _init():
        m_sc[...] = jnp.full_like(m_sc, -jnp.inf)
        l_sc[...] = jnp.zeros_like(l_sc)
        acc_sc[...] = jnp.zeros_like(acc_sc)

    def _accumulate(apply_mask):
        q = q_ref[0].astype(compute_dtype)       # (block_q, C), pre-scaled
        k = k_ref[0].astype(compute_dtype)       # (block_kv, C)
        v = v_ref[0].astype(compute_dtype)       # (block_kv, C)
        if apply_mask:
            row = qi * block_q + lax.broadcasted_iota(
                jnp.int32, (block_q, block_kv), 0)
            col = kv * block_kv + lax.broadcasted_iota(
                jnp.int32, (block_q, block_kv), 1)
            mask = col <= row
        for h in range(H):                       # static head loop, no transposes
            qh = q[:, h * D:(h + 1) * D]
            kh = k[:, h * D:(h + 1) * D]
            vh = v[:, h * D:(h + 1) * D]
            s = lax.dot_general(qh, kh, (((1,), (1,)), ((), ())),
                                preferred_element_type=jnp.float32)  # (tq, tk)
            if apply_mask:
                s = jnp.where(mask, s, jnp.float32(-1e30))   # finite bias
            m_prev = m_sc[h]                                  # (block_q, 1)
            m_new = jnp.maximum(m_prev, jnp.max(s, axis=-1, keepdims=True))
            alpha = jnp.exp(m_prev - m_new)
            p = jnp.exp(s - m_new)                            # f32 softmax math
            l_sc[h] = alpha * l_sc[h] + jnp.sum(p, axis=-1, keepdims=True)
            acc_sc[h] = alpha * acc_sc[h] + jnp.dot(
                p.astype(compute_dtype), vh,
                preferred_element_type=jnp.float32)
            m_sc[h] = m_new

    @pl.when(kv < qi)          # interior tile: no mask needed
    def _interior():
        _accumulate(apply_mask=False)

    @pl.when(kv == qi)         # diagonal tile: mask, then finalize + project
    def _diag_and_finalize():
        _accumulate(apply_mask=True)
        wp = wp_ref[...]                          # (C, C), compute dtype
        out = jnp.zeros((block_q, C), jnp.float32)
        for h in range(H):
            l_h = l_sc[h]
            inv_l = pl.reciprocal(l_h, approx=True)   # EUP
            inv_l = inv_l * (2.0 - l_h * inv_l)       # one cheap Newton step
            y_h = (acc_sc[h] * inv_l).astype(compute_dtype)       # (block_q, D)
            out = out + jnp.dot(y_h, wp[h * D:(h + 1) * D, :],
                                preferred_element_type=jnp.float32)
        o_ref[0] = (out + bp_ref[...]).astype(o_ref.dtype)  # lane-dense (tq, C)
    # kv > qi tiles: skipped entirely; their K/V DMAs were elided by the
    # jnp.minimum clamp in the index_map.


def causal_self_attention(x, w_attn, b_attn, w_proj, b_proj, *, n_head,
                          block_q=None):
    """Forward pass of CausalSelfAttention.

    x: (B, T, C); w_attn: (C, 3C); b_attn: (3C,); w_proj: (C, C); b_proj: (C,)
    Matmul operands run in x.dtype (bf16 inputs -> native MXU rate); softmax
    math and accumulation stay f32.
    """
    B, T, C = x.shape
    H = n_head
    assert C % H == 0, "n_embd must be divisible by n_head"
    D = C // H

    blk = block_q if block_q is not None else (128 if T % 128 == 0 else T)
    assert T % blk == 0, "T must be divisible by the q/kv tile size"
    n_q = n_kv = T // blk

    compute_dtype = x.dtype
    cds = jnp.dtype(compute_dtype).itemsize

    # Fold the 1/sqrt(D) softmax scale into the q projection (free).
    scale = 1.0 / math.sqrt(D)
    wq = (w_attn[:, :C] * scale).astype(compute_dtype)
    wk = w_attn[:, C:2 * C].astype(compute_dtype)
    wv = w_attn[:, 2 * C:].astype(compute_dtype)
    bq = (b_attn[:C] * scale).astype(jnp.float32).reshape(1, C)
    bk = b_attn[C:2 * C].astype(jnp.float32).reshape(1, C)
    bv = b_attn[2 * C:].astype(jnp.float32).reshape(1, C)
    wp = w_proj.astype(compute_dtype)
    bp = b_proj.astype(jnp.float32).reshape(1, C)

    # TODO(synk): for very large C (>= 2048) tile the projections over the
    # 3C / C output dimension instead of loading whole (C, C) weights to VMEM.

    # ---- kernel 1: QKV projection -> lane-dense (B, T, C) q, k, v ----------
    qkv_vmem = int(2 * 4 * blk * C * cds + 2 * 3 * C * C * cds + 6 * C * 4)
    qkv_vmem = min(64 * 1024 * 1024, max(2 * qkv_vmem, 16 * 1024 * 1024))
    q, k, v = pl.pallas_call(
        functools.partial(_qkv_proj_kernel, compute_dtype=compute_dtype),
        out_shape=tuple(jax.ShapeDtypeStruct((B, T, C), compute_dtype)
                        for _ in range(3)),
        grid=(B, n_q),
        in_specs=[
            pl.BlockSpec((1, blk, C), lambda b, i: (b, i, 0)),   # x tile
            pl.BlockSpec((C, C), lambda b, i: (0, 0)),           # Wq (scaled)
            pl.BlockSpec((C, C), lambda b, i: (0, 0)),           # Wk
            pl.BlockSpec((C, C), lambda b, i: (0, 0)),           # Wv
            pl.BlockSpec((1, C), lambda b, i: (0, 0)),           # bq (scaled)
            pl.BlockSpec((1, C), lambda b, i: (0, 0)),           # bk
            pl.BlockSpec((1, C), lambda b, i: (0, 0)),           # bv
        ],
        out_specs=tuple(pl.BlockSpec((1, blk, C), lambda b, i: (b, i, 0))
                        for _ in range(3)),
        compiler_params=pltpu.CompilerParams(
            dimension_semantics=("parallel", "parallel"),
            vmem_limit_bytes=qkv_vmem),
        cost_estimate=pl.CostEstimate(
            flops=2 * B * T * C * 3 * C,
            transcendentals=0,
            bytes_accessed=(4 * B * T * C + 3 * C * C) * cds),
    )(x.astype(compute_dtype), wq, wk, wv, bq, bk, bv)

    # ---- kernel 2: flash attention + fused output projection ---------------
    flash_vmem = int(2 * 4 * blk * C * cds + 2 * (C * C * cds + 4 * C)
                     + H * blk * (max(D, 128) + 2 * 128) * 4)
    flash_vmem = min(64 * 1024 * 1024, max(2 * flash_vmem, 16 * 1024 * 1024))
    out = pl.pallas_call(
        functools.partial(_flash_attn_proj_kernel, n_head=H, block_q=blk,
                          block_kv=blk, compute_dtype=compute_dtype),
        out_shape=jax.ShapeDtypeStruct((B, T, C), x.dtype),
        grid_spec=pltpu.PrefetchScalarGridSpec(
            num_scalar_prefetch=0,
            grid=(B, n_q, n_kv),
            in_specs=[
                pl.BlockSpec((1, blk, C), lambda b, qi, kv: (b, qi, 0)),  # q
                # clamp kv -> min(kv, qi): K/V blocks above the causal
                # diagonal are never fetched (block index does not change).
                pl.BlockSpec((1, blk, C),
                             lambda b, qi, kv: (b, jnp.minimum(kv, qi), 0)),
                pl.BlockSpec((1, blk, C),
                             lambda b, qi, kv: (b, jnp.minimum(kv, qi), 0)),
                pl.BlockSpec((C, C), lambda b, qi, kv: (0, 0)),   # W_proj
                pl.BlockSpec((1, C), lambda b, qi, kv: (0, 0)),   # b_proj
            ],
            out_specs=pl.BlockSpec((1, blk, C), lambda b, qi, kv: (b, qi, 0)),
            scratch_shapes=[
                pltpu.VMEM((H, blk, D), jnp.float32),   # acc (per head)
                pltpu.VMEM((H, blk, 1), jnp.float32),   # running max m
                pltpu.VMEM((H, blk, 1), jnp.float32),   # running sum l
            ]),
        compiler_params=pltpu.CompilerParams(
            dimension_semantics=("parallel", "parallel", "arbitrary"),
            vmem_limit_bytes=flash_vmem),
        cost_estimate=pl.CostEstimate(
            flops=2 * B * T * T * C + 2 * B * T * C * C,  # ~causal qk+pv + proj
            transcendentals=B * H * T * T // 2,
            bytes_accessed=(4 * B * T * C + C * C) * cds),
    )(q, k, v, wp, bp)
    return out


def reference(x, w_attn, b_attn, w_proj, b_proj, *, n_head):
    """Pure-JAX reference mirroring the PyTorch forward."""
    B, T, C = x.shape
    D = C // n_head
    qkv = x @ w_attn + b_attn
    q, k, v = jnp.split(qkv, 3, axis=-1)
    q = q.reshape(B, T, n_head, D).transpose(0, 2, 1, 3)
    k = k.reshape(B, T, n_head, D).transpose(0, 2, 1, 3)
    v = v.reshape(B, T, n_head, D).transpose(0, 2, 1, 3)
    s = jnp.einsum('bhtd,bhsd->bhts', q, k) / jnp.sqrt(jnp.float32(D))
    mask = jnp.tril(jnp.ones((T, T), dtype=bool))
    s = jnp.where(mask[None, None], s, -jnp.inf)
    p = jax.nn.softmax(s, axis=-1)
    y = jnp.einsum('bhts,bhsd->bhtd', p, v)
    y = y.transpose(0, 2, 1, 3).reshape(B, T, C)
    return y @ w_proj + b_proj


if __name__ == "__main__":
    B, T, C, n_head = 2, 8, 32, 4

    key = jax.random.PRNGKey(0)
    kx, k1, k2, k3, k4 = jax.random.split(key, 5)
    x = jax.random.normal(kx, (B, T, C), dtype=jnp.float32)

    bound = 1.0 / math.sqrt(C)
    w_attn = jax.random.uniform(k1, (C, 3 * C), jnp.float32, -bound, bound)
    b_attn = jax.random.uniform(k2, (3 * C,), jnp.float32, -bound, bound)
    w_proj = jax.random.uniform(k3, (C, C), jnp.float32, -bound, bound)
    b_proj = jax.random.uniform(k4, (C,), jnp.float32, -bound, bound)

    ref = reference(x, w_attn, b_attn, w_proj, b_proj, n_head=n_head)

    # 1) f32 path, single tile.
    out = jax.block_until_ready(
        causal_self_attention(x, w_attn, b_attn, w_proj, b_proj,
                              n_head=n_head))
    assert out.shape == (B, T, C)
    assert jnp.allclose(out, ref, atol=5e-4, rtol=5e-4), "f32 mismatch"

    # 2) f32 path with multiple q/kv tiles (exercises online softmax, causal
    #    tile skipping and the kv index clamp).
    T2 = 32
    x2 = jax.random.normal(jax.random.PRNGKey(1), (B, T2, C), jnp.float32)
    ref2 = reference(x2, w_attn, b_attn, w_proj, b_proj, n_head=n_head)
    out2 = jax.block_until_ready(
        causal_self_attention(x2, w_attn, b_attn, w_proj, b_proj,
                              n_head=n_head, block_q=8))
    assert jnp.allclose(out2, ref2, atol=5e-4, rtol=5e-4), "tiled f32 mismatch"

    # 3) bf16 matmul operands (native MXU rate), f32 accumulation / softmax.
    out_bf16 = jax.block_until_ready(
        causal_self_attention(x.astype(jnp.bfloat16), w_attn, b_attn,
                              w_proj, b_proj, n_head=n_head))
    assert out_bf16.dtype == jnp.bfloat16
    assert jnp.allclose(out_bf16.astype(jnp.float32), ref,
                        atol=5e-2, rtol=5e-2), "bf16 mismatch"

    print("KERNEL_OK")
</pallas_src>

<mosaic_0001>
module attributes {stable_mosaic.version = 11 : i64} {
  func.func @_qkv_proj_kernel(%arg0: i32, %arg1: i32, %arg2: memref<1x8x32xf32, #tpu.memory_space<vmem>>, %arg3: memref<32x32xf32, #tpu.memory_space<vmem>>, %arg4: memref<32x32xf32, #tpu.memory_space<vmem>>, %arg5: memref<32x32xf32, #tpu.memory_space<vmem>>, %arg6: memref<1x32xf32, #tpu.memory_space<vmem>>, %arg7: memref<1x32xf32, #tpu.memory_space<vmem>>, %arg8: memref<1x32xf32, #tpu.memory_space<vmem>>, %arg9: memref<1x8x32xf32, #tpu.memory_space<vmem>>, %arg10: memref<1x8x32xf32, #tpu.memory_space<vmem>>, %arg11: memref<1x8x32xf32, #tpu.memory_space<vmem>>) attributes {dimension_semantics = [#tpu.dimension_semantics<parallel>, #tpu.dimension_semantics<parallel>], iteration_bounds = array<i64: 2, 1>, scalar_prefetch = 0 : i64, scratch_operands = 0 : i64, tpu.core_type = #tpu.core_type<tc>, window_params = [{transform_indices = @transform_0, window_bounds = array<i64: 1, 8, 32>}, {pipeline_mode = #tpu.pipeline_mode<synchronous>, transform_indices = @transform_1, window_bounds = array<i64: 32, 32>}, {pipeline_mode = #tpu.pipeline_mode<synchronous>, transform_indices = @transform_2, window_bounds = array<i64: 32, 32>}, {pipeline_mode = #tpu.pipeline_mode<synchronous>, transform_indices = @transform_3, window_bounds = array<i64: 32, 32>}, {pipeline_mode = #tpu.pipeline_mode<synchronous>, transform_indices = @transform_4, window_bounds = array<i64: 1, 32>}, {pipeline_mode = #tpu.pipeline_mode<synchronous>, transform_indices = @transform_5, window_bounds = array<i64: 1, 32>}, {pipeline_mode = #tpu.pipeline_mode<synchronous>, transform_indices = @transform_6, window_bounds = array<i64: 1, 32>}, {transform_indices = @transform_7, window_bounds = array<i64: 1, 8, 32>}, {transform_indices = @transform_8, window_bounds = array<i64: 1, 8, 32>}, {transform_indices = @transform_9, window_bounds = array<i64: 1, 8, 32>}]} {
    %c0 = arith.constant 0 : index
    %c0_0 = arith.constant 0 : index
    %c0_1 = arith.constant 0 : index
    %0 = vector.load %arg2[%c0, %c0_0, %c0_1] : memref<1x8x32xf32, #tpu.memory_space<vmem>>, vector<1x8x32xf32>
    %1 = vector.shape_cast %0 : vector<1x8x32xf32> to vector<8x32xf32>
    %c0_2 = arith.constant 0 : index
    %c0_3 = arith.constant 0 : index
    %2 = vector.load %arg3[%c0_2, %c0_3] : memref<32x32xf32, #tpu.memory_space<vmem>>, vector<32x32xf32>
    %cst = arith.constant dense<0.000000e+00> : vector<8x32xf32>
    %3 = tpu.matmul %1, %2, %cst {dimension_numbers = #tpu.dot_dimension_numbers<[1], [0], [0], [1], [0, 0, 1, 1], [], []>} : vector<8x32xf32>, vector<32x32xf32>, vector<8x32xf32> -> vector<8x32xf32>
    %c0_4 = arith.constant 0 : index
    %c0_5 = arith.constant 0 : index
    %4 = vector.load %arg6[%c0_4, %c0_5] : memref<1x32xf32, #tpu.memory_space<vmem>>, vector<1x32xf32>
    %5 = vector.broadcast %4 : vector<1x32xf32> to vector<8x32xf32>
    %6 = arith.addf %3, %5 : vector<8x32xf32>
    %c0_6 = arith.constant 0 : index
    %c0_7 = arith.constant 0 : index
    %c0_8 = arith.constant 0 : index
    %7 = vector.load %arg9[%c0_6, %c0_7, %c0_8] : memref<1x8x32xf32, #tpu.memory_space<vmem>>, vector<1x8x32xf32>
    %8 = vector.shape_cast %7 : vector<1x8x32xf32> to vector<8x32xf32>
    %9 = vector.shape_cast %6 : vector<8x32xf32> to vector<1x8x32xf32>
    tpu.vector_store %arg9[%c0_6, %c0_7, %c0_8], %9 {strides = array<i32>} : memref<1x8x32xf32, #tpu.memory_space<vmem>>, vector<1x8x32xf32>,
    %c0_9 = arith.constant 0 : index
    %c0_10 = arith.constant 0 : index
    %10 = vector.load %arg4[%c0_9, %c0_10] : memref<32x32xf32, #tpu.memory_space<vmem>>, vector<32x32xf32>
    %cst_11 = arith.constant dense<0.000000e+00> : vector<8x32xf32>
    %11 = tpu.matmul %1, %10, %cst_11 {dimension_numbers = #tpu.dot_dimension_numbers<[1], [0], [0], [1], [0, 0, 1, 1], [], []>} : vector<8x32xf32>, vector<32x32xf32>, vector<8x32xf32> -> vector<8x32xf32>
    %c0_12 = arith.constant 0 : index
    %c0_13 = arith.constant 0 : index
    %12 = vector.load %arg7[%c0_12, %c0_13] : memref<1x32xf32, #tpu.memory_space<vmem>>, vector<1x32xf32>
    %13 = vector.broadcast %12 : vector<1x32xf32> to vector<8x32xf32>
    %14 = arith.addf %11, %13 : vector<8x32xf32>
    %c0_14 = arith.constant 0 : index
    %c0_15 = arith.constant 0 : index
    %c0_16 = arith.constant 0 : index
    %15 = vector.load %arg10[%c0_14, %c0_15, %c0_16] : memref<1x8x32xf32, #tpu.memory_space<vmem>>, vector<1x8x32xf32>
    %16 = vector.shape_cast %15 : vector<1x8x32xf32> to vector<8x32xf32>
    %17 = vector.shape_cast %14 : vector<8x32xf32> to vector<1x8x32xf32>
    tpu.vector_store %arg10[%c0_14, %c0_15, %c0_16], %17 {strides = array<i32>} : memref<1x8x32xf32, #tpu.memory_space<vmem>>, vector<1x8x32xf32>,
    %c0_17 = arith.constant 0 : index
    %c0_18 = arith.constant 0 : index
    %18 = vector.load %arg5[%c0_17, %c0_18] : memref<32x32xf32, #tpu.memory_space<vmem>>, vector<32x32xf32>
    %cst_19 = arith.constant dense<0.000000e+00> : vector<8x32xf32>
    %19 = tpu.matmul %1, %18, %cst_19 {dimension_numbers = #tpu.dot_dimension_numbers<[1], [0], [0], [1], [0, 0, 1, 1], [], []>} : vector<8x32xf32>, vector<32x32xf32>, vector<8x32xf32> -> vector<8x32xf32>
    %c0_20 = arith.constant 0 : index
    %c0_21 = arith.constant 0 : index
    %20 = vector.load %arg8[%c0_20, %c0_21] : memref<1x32xf32, #tpu.memory_space<vmem>>, vector<1x32xf32>
    %21 = vector.broadcast %20 : vector<1x32xf32> to vector<8x32xf32>
    %22 = arith.addf %19, %21 : vector<8x32xf32>
    %c0_22 = arith.constant 0 : index
    %c0_23 = arith.constant 0 : index
    %c0_24 = arith.constant 0 : index
    %23 = vector.load %arg11[%c0_22, %c0_23, %c0_24] : memref<1x8x32xf32, #tpu.memory_space<vmem>>, vector<1x8x32xf32>
    %24 = vector.shape_cast %23 : vector<1x8x32xf32> to vector<8x32xf32>
    %25 = vector.shape_cast %22 : vector<8x32xf32> to vector<1x8x32xf32>
    tpu.vector_store %arg11[%c0_22, %c0_23, %c0_24], %25 {strides = array<i32>} : memref<1x8x32xf32, #tpu.memory_space<vmem>>, vector<1x8x32xf32>,
    return
  }
  func.func @transform_0(%arg0: i32, %arg1: i32) -> (i32, i32, i32) {
    %c0_i32 = arith.constant 0 : i32
    %c0_i32_0 = arith.constant 0 : i32
    return %arg0, %arg1, %c0_i32 : i32, i32, i32
  }
  func.func @transform_1(%arg0: i32, %arg1: i32) -> (i32, i32) {
    %c0_i32 = arith.constant 0 : i32
    %c0_i32_0 = arith.constant 0 : i32
    %c0_i32_1 = arith.constant 0 : i32
    return %c0_i32, %c0_i32_0 : i32, i32
  }
  func.func @transform_2(%arg0: i32, %arg1: i32) -> (i32, i32) {
    %c0_i32 = arith.constant 0 : i32
    %c0_i32_0 = arith.constant 0 : i32
    %c0_i32_1 = arith.constant 0 : i32
    return %c0_i32, %c0_i32_0 : i32, i32
  }
  func.func @transform_3(%arg0: i32, %arg1: i32) -> (i32, i32) {
    %c0_i32 = arith.constant 0 : i32
    %c0_i32_0 = arith.constant 0 : i32
    %c0_i32_1 = arith.constant 0 : i32
    return %c0_i32, %c0_i32_0 : i32, i32
  }
  func.func @transform_4(%arg0: i32, %arg1: i32) -> (i32, i32) {
    %c0_i32 = arith.constant 0 : i32
    %c0_i32_0 = arith.constant 0 : i32
    %c0_i32_1 = arith.constant 0 : i32
    return %c0_i32, %c0_i32_0 : i32, i32
  }
  func.func @transform_5(%arg0: i32, %arg1: i32) -> (i32, i32) {
    %c0_i32 = arith.constant 0 : i32
    %c0_i32_0 = arith.constant 0 : i32
    %c0_i32_1 = arith.constant 0 : i32
    return %c0_i32, %c0_i32_0 : i32, i32
  }
  func.func @transform_6(%arg0: i32, %arg1: i32) -> (i32, i32) {
    %c0_i32 = arith.constant 0 : i32
    %c0_i32_0 = arith.constant 0 : i32
    %c0_i32_1 = arith.constant 0 : i32
    return %c0_i32, %c0_i32_0 : i32, i32
  }
  func.func @transform_7(%arg0: i32, %arg1: i32) -> (i32, i32, i32) {
    %c0_i32 = arith.constant 0 : i32
    %c0_i32_0 = arith.constant 0 : i32
    return %arg0, %arg1, %c0_i32 : i32, i32, i32
  }
  func.func @transform_8(%arg0: i32, %arg1: i32) -> (i32, i32, i32) {
    %c0_i32 = arith.constant 0 : i32
    %c0_i32_0 = arith.constant 0 : i32
    return %arg0, %arg1, %c0_i32 : i32, i32, i32
  }
  func.func @transform_9(%arg0: i32, %arg1: i32) -> (i32, i32, i32) {
    %c0_i32 = arith.constant 0 : i32
    %c0_i32_0 = arith.constant 0 : i32
    return %arg0, %arg1, %c0_i32 : i32, i32, i32
  }
}

</mosaic_0001>

<bundles_post_ra>
// kernel: tpu_custom_call.1
= control target key start
LH: loop header
LB: loop body
LE: loop exit
PB: predicated region body
PF: predicated region fallthrough
CT: control target
= control target key end

     0   :  { %s1812_s0 = inlined_call_operand.hbm [shape: f32[2,8,32], index: 0, kind: input, shape index: {}]   ;;  %s1813_s1 = inlined_call_operand.hbm [shape: f32[32,32], index: 1, kind: input, shape index: {}]   ;;  %s1814_s2 = inlined_call_operand.hbm [shape: f32[32,32], index: 2, kind: input, shape index: {}]   ;;  %s1815_s3 = inlined_call_operand.hbm [shape: f32[32,32], index: 3, kind: input, shape index: {}]   ;;  %s1816_s4 = inlined_call_operand.vmem [shape: f32[1,32], index: 4, kind: input, shape index: {}]   ;;  %s1817_s5 = inlined_call_operand.vmem [shape: f32[1,32], index: 5, kind: input, shape index: {}]   ;;  %s1818_s6 = inlined_call_operand.vmem [shape: f32[1,32], index: 6, kind: input, shape index: {}]   ;;  %s1819_s7 = inlined_call_operand.hbm [shape: f32[2,8,32], index: 7, kind: output, shape index: {0}]   ;;  %s1820_s8 = inlined_call_operand.hbm [shape: f32[2,8,32], index: 8, kind: output, shape index: {1}]   ;;  %s1821_s9 = inlined_call_operand.hbm [shape: f32[2,8,32], index: 9, kind: output, shape index: {2}]  }
   0x1   :  { %1830 = sst [smem:[#allocation21_spill]] %s1812_s0 }
   0x2   :  { %1831 = sst [smem:[#allocation22_spill]] %s1818_s6 }
   0x3   :  { %1832 = sst [smem:[#allocation23_spill]] %s1820_s8 }
   0x4   :  { %1833 = sst [smem:[#allocation24_spill]] %s1821_s9 }
   0x5   :  { %15 = vsyncpa [#allocation3], 0 }
   0x6   :  { %17 = vsyncpa [#allocation3 + $0x1], 0 }
   0x7   :  { %18 = vsyncpa [#allocation6], 0 }
   0x8   :  { %19 = vsyncpa [#allocation9], 0 }
   0x9   :  { %20 = vsyncpa [#allocation4], 0 }
   0xa   :  { %22 = vsyncpa [#allocation4 + $0x1], 0 }
   0xb   :  { %23 = vsyncpa [#allocation12], 0 }
   0xc   :  { %25 = vsyncpa [#allocation12 + $0x1], 0  ;;  %s1440_s30 = smov 0   ;;  %s1442_s10 = smov 0  }
   0xd   :  { %s1444_s11 = smov 0   ;;  %s1446_s12 = smov 0  }
   0xe   :  { %s1448_s13 = smov 0   ;;  %s1450_s14 = smov 0  }
   0xf LB: > { %1834 = sst [smem:[#allocation19_spill]] %s1356_s30  ;;  %s1471_s15 = sadd.s32 4294967295, %s1376_s14   ;;  %s1376_s14 = sphi %s1450_s14, %s31_s14   ;;  %s1372_s13 = sphi %s1448_s13, %s1864_s13   ;;  %s1368_s12 = sphi %s1446_s12, %s1863_s12   ;;  %s1364_s11 = sphi %s1444_s11, %s1862_s11   ;;  %s1360_s10 = sphi %s1442_s10, %s1861_s10   ;;  %s1356_s30 = sphi %s1440_s30, %s1860_s30  }
  0x10   : > { %s1822_s16 = sadd.s32 4294967294, %s1376_s14   ;;  %p65_p0 = scmp.ne.s32.totalorder %s1360_s10, %s1356_s30 }
  0x11   : > { %p1824_p1 = scmp.eq.s32.totalorder %s1471_s15, 0  ;;  %p223_p3 = scmp.eq.s32.totalorder %s1822_s16, 1 }
  0x12   : > { %p909_p5 = scmp.ge.s32.totalorder %s1376_s14, 1  ;;  %p286_p7 = scmp.lt.s32.totalorder %s1376_s14, 3 }
  0x13   : > { %p1482_p4 = por %p1824_p1, %p65_p0  ;;  %p1487_p6 = por %p223_p3, %p65_p0 }
  0x14   : > { %p1492_p8 = pnand %p909_p5, %p286_p7  ;;  %s1378_s20 = smov [#allocation5]  }
  0x15   : > { %s1835_s17 = scalar_select %p1482_p4, 1, 0 }
  0x16   : > { %s1836_s18 = scalar_select %p1487_p6, 1, 0 }
  0x17   : > { %s1838_s19 = scalar_select %p1492_p8, 1, 0 }
  0x18   : > { %1837 = sst [smem:[#allocation20_spill]] %s1836_s18  ;;  %s298_s21 = sshll.u32 %s1378_s20, 4  ;;  %s1496_s21 = int_to_ptr.vmem [resolvable:$true] %s298_s21 }
  0x19   : > { %p1024_p9 = pneg %p1492_p8  ;;  %s1379_s23 = smov [#allocation7]  }
  0x1a   : > { %s311_s24 = sshll.u32 %s1379_s23, 4  ;;  %s1380_s25 = smov [#allocation8]   ;;  %s1507_s24 = int_to_ptr.vmem [resolvable:$true] %s311_s24 }
  0x1b   : > { %p1503_p11 = pnand %p1024_p9, %p1824_p1  ;;  %s1509_s26 = sshll.u32 %s1380_s25, 4  ;;  %s325_s26 = int_to_ptr.vmem [resolvable:$true] %s1509_s26 }
  0x1c   : > { %s1112_s29 = scalar_lea.hbm %s1813_s1, 512 }
  0x1d   : > { %p1113_p12 = scmp.ne.s32.totalorder %s1813_s1, %s1112_s29  ;;  %p1519_p13 = pneg %p1503_p11 }
  0x1e   : > { %p1119_p5 = scmp.lt.u32.totalorder %s1112_s29, %s1813_s1 }
  0x1f   : > { %p1115_p0 = pnand %p1519_p13, %p1113_p12 }
  0x21   : > { %p1116_p3 = pneg %p1115_p0 }
  0x23   : > { %p1121_p7 = pnand %p1119_p5, %p1116_p3 }
  0x25   : > { %1124 = shalt.err (!%p1121_p7)
}
  0x26   : > { %s1125_s16 = scalar_lea.vmem %s1496_s21, 512  ;;  %p1133_p2 = scmp.lt.s32.totalorder %s1496_s21, %s1496_s21 }
  0x27   : > { %p1126_p9 = scmp.ne.s32.totalorder %s1496_s21, %s1125_s16  ;;  %p1134_p6 = scmp.lt.s32.totalorder %s1125_s16, %s1125_s16 }
  0x29   : > { %p1128_p10 = pnand %p1126_p9, %p1519_p13  ;;  %p1135_p12 = por %p1134_p6, %p1133_p2 }
  0x2b   : > { %p1129_p1 = pneg %p1128_p10 }
  0x2d   : > { %p1136_p0 = pnand %p1135_p12, %p1129_p1 }
  0x2f   : > { %1139 = shalt.err (!%p1136_p0)
}
  0x30   : > { %s1381_s27 = smov 128   ;;  %s1382_s28 = smov 8  }
  0x31   : > { %1027 = dma.hbm_to_vmem [thread:$0]  (!%p1503_p11), %s1813_s1, 512, %s1496_s21, [#allocation6], %s1381_s27, %s1381_s27, %s1382_s28  }
  0x32   : > { %s1140_s16 = scalar_lea.hbm %s1814_s2, 512 }
  0x33   : > { %p1141_p1 = scmp.ne.s32.totalorder %s1814_s2, %s1140_s16  ;;  %p1147_p10 = scmp.lt.u32.totalorder %s1140_s16, %s1814_s2 }
  0x35   : > { %p1143_p2 = pnand %p1141_p1, %p1519_p13 }
  0x37   : > { %p1144_p6 = pneg %p1143_p2 }
  0x39   : > { %p1149_p3 = pnand %p1147_p10, %p1144_p6 }
  0x3b   : > { %1152 = shalt.err (!%p1149_p3)
}
  0x3c   : > { %s1153_s21 = scalar_lea.vmem %s1507_s24, 512  ;;  %p1161_p12 = scmp.lt.s32.totalorder %s1507_s24, %s1507_s24 }
  0x3d   : > { %p1154_p5 = scmp.ne.s32.totalorder %s1507_s24, %s1153_s21  ;;  %p1162_p0 = scmp.lt.s32.totalorder %s1153_s21, %s1153_s21 }
  0x3f   : > { %p1156_p7 = pnand %p1154_p5, %p1519_p13  ;;  %p1163_p1 = por %p1162_p0, %p1161_p12 }
  0x41   : > { %p1157_p9 = pneg %p1156_p7 }
  0x43   : > { %p1164_p2 = pnand %p1163_p1, %p1157_p9 }
  0x45   : > { %1167 = shalt.err (!%p1164_p2)
}
  0x46   : > { %1030 = dma.hbm_to_vmem [thread:$0]  (!%p1503_p11), %s1814_s2, 512, %s1507_s24, [#allocation6], %s1381_s27, %s1381_s27, %s1382_s28  }
  0x47   : > { %s1168_s29 = scalar_lea.hbm %s1815_s3, 512 }
  0x48   : > { %p1169_p6 = scmp.ne.s32.totalorder %s1815_s3, %s1168_s29  ;;  %p1175_p5 = scmp.lt.u32.totalorder %s1168_s29, %s1815_s3 }
  0x4a   : > { %p1171_p10 = pnand %p1169_p6, %p1519_p13 }
  0x4c   : > { %p1172_p3 = pneg %p1171_p10 }
  0x4e   : > { %p1177_p7 = pnand %p1175_p5, %p1172_p3 }
  0x50   : > { %1180 = shalt.err (!%p1177_p7)
}
  0x51   : > { %s1181_s21 = scalar_lea.vmem %s325_s26, 512  ;;  %p1189_p1 = scmp.lt.s32.totalorder %s325_s26, %s325_s26 }
  0x52   : > { %p1182_p9 = scmp.ne.s32.totalorder %s325_s26, %s1181_s21  ;;  %p1190_p2 = scmp.lt.s32.totalorder %s1181_s21, %s1181_s21 }
  0x54   : > { %p1184_p12 = pnand %p1182_p9, %p1519_p13  ;;  %p1191_p4 = por %p1190_p2, %p1189_p1 }
  0x56   : > { %p1185_p0 = pneg %p1184_p12 }
  0x58   : > { %p1192_p8 = pnand %p1191_p4, %p1185_p0 }
  0x5a   : > { %1195 = shalt.err (!%p1192_p8)
}
  0x5b   : > { %1033 = dma.hbm_to_vmem [thread:$0]  (!%p1503_p11), %s1815_s3, 512, %s325_s26, [#allocation9], %s1381_s27, %s1381_s27, %s1382_s28  }
  0x5c   : > { %s52_s18 = sadd.s32 1, %s1364_s11  ;;  %s43_s22 = sadd.s32 1, %s1372_s13 }
  0x5d   : > { %p59_p4 = scmp.ne.s32.totalorder %s1364_s11, %s1360_s10  ;;  %p45_p8 = scmp.ge.s32.totalorder %s43_s22, 2 }
  0x5e   : > { %p60_p13 = scmp.eq.s32.totalorder %s1376_s14, 0  ;;  %p1841_p6 = scmp.eq.s32.totalorder %s1471_s15, 1 }
  0x5f   : > { %p1051_p3 = scmp.lt.s32.totalorder %s1376_s14, 2  ;;  %s1866_s22 = smov (%p45_p8, %s43_s22), 0 }
  0x60   : > { %p1598_p10 = por %p1841_p6, %p59_p4  ;;  %p61_p5 = por %p60_p13, %p59_p4 }
  0x61   : > { %s347_s9 = sand.u32 1, %s1364_s11   ;;  %s47_s30 = ssub.s32 %s1372_s13, %s1866_s22 }
  0x62   : > { %p50_p7 = scmp.eq.s32.totalorder %s47_s30, 0  ;;  %s914_s26 = sshll.u32 %s347_s9, 3 }
  0x63   : > { %s915_s27 = sshll.u32 %s1372_s13, 7  ;;  %s1843_s0 = sld [smem:[#allocation21_spill]] }
  0x64   : > { %s1610_s28 = scalar_select %p50_p7, %s1364_s11, %s52_s18  }
  0x65   : > { %s351_s25 = scalar_lea.vmem [#allocation2], %s914_s26  ;;  %p1621_p11 = pnand %p1051_p3, %p61_p5 }
  0x66   : > { %s359_s16 = sshll.u32 %s351_s25, 4  ;;  %s348_s24 = scalar_lea.sflag [#allocation3], %s347_s9  ;;  %s1617_s16 = int_to_ptr.vmem [resolvable:$true] %s359_s16 }
  0x67   : > { %p1198_p12 = pneg %p1621_p11 }
  0x69   : > { %s1615_s23 = scalar_lea.hbm %s1843_s0, %s915_s27  ;;  %s1201_s26 = scalar_lea.hbm %s1843_s0, 256 }
  0x6a   : > { %s1196_s6 = scalar_lea.hbm %s1615_s23, 128  ;;  %p1202_p2 = scmp.lt.u32.totalorder %s1615_s23, %s1843_s0 }
  0x6b   : > { %p1197_p9 = scmp.ne.s32.totalorder %s1615_s23, %s1196_s6  ;;  %p1203_p4 = scmp.lt.u32.totalorder %s1201_s26, %s1196_s6 }
  0x6c   : > { %p1205_p13 = scmp.lt.u32.totalorder %s1196_s6, %s1615_s23 }
  0x6d   : > { %p1199_p0 = pnand %p1198_p12, %p1197_p9  ;;  %p1204_p8 = por %p1203_p4, %p1202_p2 }
  0x6f   : > { %p1200_p1 = pneg %p1199_p0  ;;  %p1206_p6 = por %p1205_p13, %p1204_p8 }
  0x71   : > { %p1207_p3 = pnand %p1206_p6, %p1200_p1 }
  0x73   : > { %1210 = shalt.err (!%p1207_p3)
}
  0x74   : > { %s1211_s9 = scalar_lea.vmem %s1617_s16, 128  ;;  %s1383_s20 = smov [#allocation2]  }
  0x75   : > { %p1212_p5 = scmp.ne.s32.totalorder %s1617_s16, %s1211_s9  ;;  %s1216_s25 = sshll.u32 %s1383_s20, 4  ;;  %s1217_s25 = int_to_ptr.vmem [resolvable:$false] %s1216_s25 }
  0x76   : > { %s1218_s18 = scalar_lea.vmem %s1217_s25, 256  ;;  %p1219_p0 = scmp.lt.s32.totalorder %s1617_s16, %s1217_s25 }
  0x77   : > { %p1214_p7 = pnand %p1212_p5, %p1198_p12  ;;  %p1220_p2 = scmp.lt.s32.totalorder %s1218_s18, %s1211_s9 }
  0x79   : > { %p1215_p9 = pneg %p1214_p7  ;;  %p1221_p4 = por %p1220_p2, %p1219_p0 }
  0x7b   : > { %p1222_p8 = pnand %p1221_p4, %p1215_p9 }
  0x7d   : > { %1225 = shalt.err (!%p1222_p8)
}
  0x7e   : > { %1037 = dma.hbm_to_vmem [thread:$0]  (!%p1621_p11), %s1615_s23, 128, %s1617_s16, %s348_s24  }
  0x7f   : > { %p1845_p1 = scmp.ne.s32.totalorder %s1838_s19, 0 }
  0x80   : > { %s1653_s6 = sand.u32 (!%p1845_p1), 1, %s1360_s10   ;;  %p1846_p12 = scmp.ne.s32.totalorder (!%p1845_p1), %s1835_s17, 0 }
  0x81   : > { %368 = sbr.rel (%p1845_p1) target bundleno = 432 (0x1b0), region = 48  ;;  %s1656_s30 = sshll.u32 (!%p1845_p1), %s1653_s6, 3 }
  0x82   : > { %s371_s26 = scalar_lea.sflag (!%p1845_p1), [#allocation3], %s1653_s6  ;;  %s374_s27 = scalar_lea.vmem (!%p1845_p1), [#allocation2], %s1656_s30 }
  0x88   : > { %1335 = dma.done.wait (%p1846_p12), %s371_s26, 128  }
  0x89   : > { %1337 = vsyncadd (%p1846_p12), %s371_s26, 4294967168  ;;  %p1847_p11 = scmp.eq.s32.totalorder %s1471_s15, 0 }
  0x8b   : > { %1339 = dma.done.wait (%p1847_p11), [#allocation6], 1024   ;;  %p1848_p13 = pmov %p1847_p11 }
  0x8c   : > { %p1849_p6 = pmov %p1847_p11 }
  0x8d   : > { %1341 = vsyncadd (%p1848_p13), [#allocation6], 4294966272 }
  0x8e   : > { %1343 = dma.done.wait (%p1849_p6), [#allocation9], 512   ;;  %p1850_p3 = pmov %p1849_p6 }
  0x8f   : > { %v1384_v0 = vmov 0.0|0.0   ;;  %vm1385_vm0 = vmmov 0   ;;  %v1386_v1 = vmov 0.0   ;;  %v432_v2 = vld [vmem:[#allocation5] sm:$0xff]  ;;  %v433_v3 = vld [vmem:[#allocation5 + $0x8] sm:$0xff]  ;;  %v434_v4 = vld [vmem:[#allocation5 + $0x10] sm:$0xff] }
  0x90   : > { %1345 = vsyncadd (%p1850_p3), [#allocation9], 4294966784  ;;  %986 = vmatprep.subr.bf16.mxu0 %v1384_v0  ;;  %992 = vmatprep.subr.bf16.mxu1 %v1384_v0  ;;  %v987_v5 = vpack.c.bf16 %v433_v3, %v432_v2  ;;  %v435_v6 = vld [vmem:[#allocation5 + $0x18] sm:$0xff]  ;;  %v518_v7 = vld [vmem:[#allocation7] sm:$0xff]  ;;  %vm443_vm1 = vcmask 261120   ;;  %s1685_s16 = sshll.u32 %s1368_s12, 7 }
  0x91   : > { %961 = vmatprep.mubr.msk.f32.mxu0 %vm1385_vm0, %v1386_v1  ;;  %972 = vmatprep.mubr.msk.f32.mxu1 %vm1385_vm0, %v1386_v1  ;;  %v519_v8 = vld [vmem:[#allocation7 + $0x8] sm:$0xff]  ;;  %v990_v10 = vpack.c.bf16 %v435_v6, %v434_v4  ;;  %v520_v11 = vld [vmem:[#allocation7 + $0x10] sm:$0xff]  ;;  %v521_v12 = vld [vmem:[#allocation7 + $0x18] sm:$0xff]  ;;  %s416_s21 = scalar_lea.vmem [#allocation10], %s1656_s30  ;;  %s423_s20 = scalar_lea.vmem [#allocation11], %s1656_s30 }
  0x92   : > { %v993_v9 = vpack.c.bf16 %v519_v8, %v518_v7  ;;  %988 = vmatpush3.bf16.msra.mxu0 %v987_v5  ;;  %v600_v13 = vld [vmem:[#allocation8] sm:$0xff]  ;;  %v601_v14 = vld [vmem:[#allocation8 + $0x8] sm:$0xff]  ;;  %v996_v15 = vpack.c.bf16 %v521_v12, %v520_v11  ;;  %v431_v16 = vld [vmem:[%s374_s27] sm:$0xff]  ;;  %s707_s24 = sshll.u32 %s416_s21, 4  ;;  %s721_s25 = sshll.u32 %s423_s20, 4  ;;  %s1698_s24 = int_to_ptr.vmem [resolvable:$true] %s707_s24  ;;  %s1706_s25 = int_to_ptr.vmem [resolvable:$true] %s721_s25 }
  0x93   : > { %989 = vmatprep.subr.bf16.mxu0 %v1384_v0  ;;  %v999_v17 = vpack.c.bf16 %v601_v14, %v600_v13  ;;  %v602_v18 = vld [vmem:[#allocation8 + $0x10] sm:$0xff]  ;;  %v603_v19 = vld [vmem:[#allocation8 + $0x18] sm:$0xff]  ;;  %s1696_s12 = scalar_lea.hbm %s1819_s7, %s1685_s16  ;;  %s1851_s23 = sld [smem:[#allocation23_spill]] }
  0x94   : > { %994 = vmatpush3.bf16.msra.mxu1 %v993_v9  ;;  %v1002_v20 = vpack.c.bf16 %v603_v19, %v602_v18  ;;  %v924_v21 = vld [vmem:[%s1816_s4] ss:$0 sm:$0xff]  ;;  %s683_s9 = scalar_lea.sflag [#allocation4], %s1653_s6  ;;  %s1226_s18 = scalar_lea.vmem %s1698_s24, 128 }
  0x95   : > { %995 = vmatprep.subr.bf16.mxu1 %v1384_v0  ;;  %v926_v22 = vld [vmem:[%s1817_s5] ss:$0 sm:$0xff]  ;;  %p1227_p5 = scmp.ne.s32.totalorder %s1698_s24, %s1226_s18  ;;  %s1387_s26 = smov [#allocation10]  }
  0x96   : > { %991 = vmatpush3.bf16.msra.mxu0 %v990_v10  ;;  %s1230_s17 = sshll.u32 %s1387_s26, 4  ;;  %s1231_s17 = int_to_ptr.vmem [resolvable:$false] %s1230_s17 }
  0x97   : > { %998 = vmatprep.subr.bf16.mxu0 %v1384_v0  ;;  %p1228_p7 = pnand %p1227_p5, %p1598_p10  ;;  %s1232_s0 = scalar_lea.vmem %s1231_s17, 256 }
  0x98   : > { %997 = vmatpush3.bf16.msra.mxu1 %v996_v15  ;;  %p1233_p0 = scmp.lt.s32.totalorder %s1698_s24, %s1231_s17  ;;  %p1234_p2 = scmp.lt.s32.totalorder %s1232_s0, %s1226_s18 }
  0x99   : > { %962 = vmatmul.mubr.msk.f32.vlgmr.msra.gmra.mrb[0].mxu0 %vm443_vm1, %v431_v16  ;;  %s1704_s29 = scalar_lea.hbm %s1851_s23, %s1685_s16  ;;  %p1229_p9 = pneg %p1228_p7 }
  0x9a   : > { %1000 = vmatpush3.bf16.msra.mxu0 %v999_v17  ;;  %983 = vmatprep.mubr.msk.f32.mxu0 %vm1385_vm0, %v1386_v1  ;;  %p1235_p4 = por %p1234_p2, %p1233_p0 }
  0x9b   : > { %973 = vmatmul.mubr.msk.f32.vlgmr.msra.gmra.mrb[0].mxu1 %vm443_vm1, %v431_v16  ;;  %1001 = vmatprep.subr.bf16.mxu0 %v1384_v0 }
  0x9c   : > { %p1236_p8 = pnand %p1235_p4, %p1229_p9 }
  0x9e   : > { %1003 = vmatpush3.bf16.msra.mxu0 %v1002_v20 }
  0xa1   : > { %984 = vmatmul.mubr.msk.f32.vlgmr.msra.gmra.mrb[2].mxu0 %vm443_vm1, %v431_v16 }
 0x16c   : > { %v513_v23 = vpop.f32.mrb[0].mxu0 }
 0x16d   : > { %v514_v24 = vadd.f32 %v924_v21, %v513_v23  ;;  %v963_v25 = vpop.f32.mrb[1].mxu0 }
 0x16e   : > { %v595_v26 = vpop.f32.mrb[0].mxu1 }
 0x16f   : > { %v596_v27 = vadd.f32 %v926_v22, %v595_v26  ;;  %v974_v28 = vpop.f32.mrb[1].mxu1  ;;  %517 = vst.msk [vmem:[%s416_s21] sm:$0xff] %vm443_vm1, %v514_v24 }
 0x171   : > { %599 = vst.msk [vmem:[%s423_s20] sm:$0xff] %vm443_vm1, %v596_v27 }
 0x172   : > { %1239 = shalt.err (!%p1236_p8)
}
 0x173   : > { %s1240_s6 = scalar_lea.hbm %s1696_s12, 128  ;;  %s1244_s27 = scalar_lea.hbm %s1819_s7, 256 }
 0x174   : > { %p1241_p1 = scmp.ne.s32.totalorder %s1696_s12, %s1240_s6  ;;  %p1245_p13 = scmp.lt.u32.totalorder %s1696_s12, %s1819_s7 }
 0x175   : > { %p1246_p6 = scmp.lt.u32.totalorder %s1244_s27, %s1240_s6  ;;  %p1248_p5 = scmp.lt.u32.totalorder %s1240_s6, %s1696_s12 }
 0x176   : > { %p1242_p12 = pnand %p1241_p1, %p1598_p10 }
 0x177   : > { %p1247_p3 = por %p1246_p6, %p1245_p13 }
 0x178   : > { %p1243_p11 = pneg %p1242_p12 }
 0x179   : > { %p1249_p7 = por %p1248_p5, %p1247_p3 }
 0x17b   : > { %p1250_p9 = pnand %p1249_p7, %p1243_p11 }
 0x17d   : > { %1253 = shalt.err (!%p1250_p9)
}
 0x17e   : > { %1018 = dma.vmem_to_hbm [thread:$0]  (%p1598_p10), %s1698_s24, 128, %s1696_s12, %s683_s9  }
 0x17f   : > { %s1852_s0 = sand.u32 1, %s1471_s15   ;;  %s1254_s26 = scalar_lea.vmem %s1706_s25, 128 }
 0x180   : > { %s1734_s18 = scalar_lea.sflag [#allocation12], %s1852_s0  ;;  %p1255_p0 = scmp.ne.s32.totalorder %s1706_s25, %s1254_s26 }
 0x181   : > { %s1388_s6 = smov [#allocation11]  }
 0x182   : > { %p1256_p2 = pnand %p1255_p0, %p1598_p10  ;;  %s1258_s21 = sshll.u32 %s1388_s6, 4  ;;  %s1259_s21 = int_to_ptr.vmem [resolvable:$false] %s1258_s21 }
 0x183   : > { %s1260_s20 = scalar_lea.vmem %s1259_s21, 256  ;;  %p1261_p8 = scmp.lt.s32.totalorder %s1706_s25, %s1259_s21 }
 0x184   : > { %p1257_p4 = pneg %p1256_p2  ;;  %p1262_p1 = scmp.lt.s32.totalorder %s1260_s20, %s1254_s26 }
 0x186   : > { %p1263_p12 = por %p1262_p1, %p1261_p8 }
 0x188   : > { %p1264_p11 = pnand %p1263_p12, %p1257_p4 }
 0x18a   : > { %1267 = shalt.err (!%p1264_p11)
}
 0x18b   : > { %s1268_s15 = scalar_lea.hbm %s1704_s29, 128  ;;  %s1272_s9 = scalar_lea.hbm %s1851_s23, 256 }
 0x18c   : > { %p1269_p13 = scmp.ne.s32.totalorder %s1704_s29, %s1268_s15  ;;  %p1273_p5 = scmp.lt.u32.totalorder %s1704_s29, %s1851_s23 }
 0x18d   : > { %p1274_p7 = scmp.lt.u32.totalorder %s1272_s9, %s1268_s15  ;;  %p1276_p0 = scmp.lt.u32.totalorder %s1268_s15, %s1704_s29 }
 0x18e   : > { %p1270_p6 = pnand %p1269_p13, %p1598_p10 }
 0x18f   : > { %p1275_p9 = por %p1274_p7, %p1273_p5 }
 0x190   : > { %p1271_p3 = pneg %p1270_p6 }
 0x191   : > { %p1277_p2 = por %p1276_p0, %p1275_p9 }
 0x193   : > { %p1278_p4 = pnand %p1277_p2, %p1271_p3 }
 0x195   : > { %1281 = shalt.err (!%p1278_p4)
}
 0x196   : > { %1019 = dma.vmem_to_hbm [thread:$0]  (%p1598_p10), %s1706_s25, 128, %s1704_s29, %s1734_s18   ;;  %v677_v30 = vpop.f32.mrb[2].mxu0 }
 0x197   : > { %s1853_s26 = sld [smem:[#allocation22_spill]]  ;;  %s430_s6 = scalar_lea.vmem [#allocation13], %s1656_s30  ;;  %v985_v32 = vpop.f32.mrb[3].mxu0 }
 0x198   : > { %s735_s21 = sshll.u32 %s430_s6, 4  ;;  %s1854_s24 = sld [smem:[#allocation24_spill]]  ;;  %s736_s21 = int_to_ptr.vmem [resolvable:$true] %s735_s21 }
 0x199   : > { %s1282_s9 = scalar_lea.vmem %s736_s21, 128  ;;  %s1389_s25 = smov [#allocation13]  }
 0x19a   : > { %p1283_p8 = scmp.ne.s32.totalorder %s736_s21, %s1282_s9  ;;  %s1286_s29 = sshll.u32 %s1389_s25, 4  ;;  %s1287_s29 = int_to_ptr.vmem [resolvable:$false] %s1286_s29 }
 0x19b   : > { %s1288_s30 = scalar_lea.vmem %s1287_s29, 256  ;;  %p1289_p11 = scmp.lt.s32.totalorder %s736_s21, %s1287_s29 }
 0x19c   : > { %p1284_p1 = pnand %p1283_p8, %p1598_p10  ;;  %p1290_p13 = scmp.lt.s32.totalorder %s1288_s30, %s1282_s9 }
 0x19d   : > { %v928_v29 = vld [vmem:[%s1853_s26] ss:$0 sm:$0xff] }
 0x19e   : > { %v678_v31 = vadd.f32 %v928_v29, %v677_v30  ;;  %s1766_s12 = scalar_lea.hbm %s1854_s24, %s1685_s16  ;;  %p1285_p12 = pneg %p1284_p1 }
 0x19f   : > { %p1291_p6 = por %p1290_p13, %p1289_p11 }
 0x1a0   : > { %681 = vst.msk [vmem:[%s430_s6] sm:$0xff] %vm443_vm1, %v678_v31 }
 0x1a1   : > { %p1292_p3 = pnand %p1291_p6, %p1285_p12 }
 0x1a3   : > { %1295 = shalt.err (!%p1292_p3)
}
 0x1a4   : > { %s1296_s16 = scalar_lea.hbm %s1766_s12, 128  ;;  %s1300_s17 = scalar_lea.hbm %s1854_s24, 256 }
 0x1a5   : > { %p1297_p5 = scmp.ne.s32.totalorder %s1766_s12, %s1296_s16  ;;  %p1301_p0 = scmp.lt.u32.totalorder %s1766_s12, %s1854_s24 }
 0x1a6   : > { %p1302_p2 = scmp.lt.u32.totalorder %s1300_s17, %s1296_s16  ;;  %p1304_p8 = scmp.lt.u32.totalorder %s1296_s16, %s1766_s12 }
 0x1a7   : > { %p1298_p7 = pnand %p1297_p5, %p1598_p10 }
 0x1a8   : > { %p1303_p4 = por %p1302_p2, %p1301_p0 }
 0x1a9   : > { %p1299_p9 = pneg %p1298_p7 }
 0x1aa   : > { %p1305_p1 = por %p1304_p8, %p1303_p4 }
 0x1ac   : > { %p1306_p12 = pnand %p1305_p1, %p1299_p9 }
 0x1ae   : > { %1309 = shalt.err (!%p1306_p12)
}
 0x1af   : > { %1020 = dma.vmem_to_hbm [thread:$0]  (%p1598_p10), %s736_s21, 128, %s1766_s12, %s1734_s18  }
 0x1b0 PF: > { %s1855_s6 = sld [smem:[#allocation19_spill]]  ;;  %s1856_s20 = sld [smem:[#allocation20_spill]] }
 0x1b1   : > { %p1858_p13 = scmp.ge.s32.totalorder %s1376_s14, 2 }
 0x1b6   : > { %s747_s15 = sand.u32 1, %s1855_s6   ;;  %p1857_p11 = scmp.ne.s32.totalorder %s1856_s20, 0 }
 0x1b7   : > { %s748_s9 = scalar_lea.sflag [#allocation4], %s747_s15 }
 0x1b8   : > { %p1039_p6 = pnand %p1858_p13, %p1857_p11 }
 0x1ba   : > { %1347 = dma.done.wait (!%p1039_p6), %s748_s9, 128  }
 0x1bb   : > { %1349 = vsyncadd (!%p1039_p6), %s748_s9, 4294967168  ;;  %s1859_s25 = sadd.s32 4294967294, %s1376_s14  }
 0x1bc   : > { %s756_s29 = sand.u32 1, %s1859_s25  }
 0x1bd   : > { %s757_s30 = scalar_lea.sflag [#allocation12], %s756_s29 }
 0x1be   : > { %1351 = dma.done.wait (!%p1039_p6), %s757_s30, 256  }
 0x1bf   : > { %1353 = vsyncadd (!%p1039_p6), %s757_s30, 4294967040  ;;  %s31_s14 = sadd.s32 1, %s1376_s14   ;;  %s1860_s30 = smov %s1360_s10 }
 0x1c0   : > { %p28_p10 = scmp.ge.s32.totalorder %s31_s14, 4   ;;  %s1861_s10 = smov %s1364_s11 }
 0x1c1   : > { %s1862_s11 = smov %s1610_s28  ;;  %s1863_s12 = smov %s1372_s13 }
 0x1c2   : > { %s1864_s13 = smov %s1866_s22  ;;  %30 = sbr.rel (!%p28_p10) target bundleno = 15 (0xf), region = 137 }
 0x1c9   :  { %771 = vsyncpa [#allocation3], 1 }
 0x1ca   :  { %773 = vsyncpa [#allocation3 + $0x1], 1 }
 0x1cb   :  { %774 = vsyncpa [#allocation6], 1 }
 0x1cc   :  { %775 = vsyncpa [#allocation9], 1 }
 0x1cd   :  { %776 = vsyncpa [#allocation4], 1 }
 0x1ce   :  { %778 = vsyncpa [#allocation4 + $0x1], 1 }
 0x1cf   :  { %779 = vsyncpa [#allocation12], 1 }
 0x1d0   :  { %781 = vsyncpa [#allocation12 + $0x1], 1 }

</bundles_post_ra>
